<compile_context>
chip_gen: v6e
topology: v6e:2x2x1
jax: 0.10.0
libtpu: 0.0.40
codegen_flags: <defaults>
</compile_context>

<pallas_src>
import functools

import jax
import jax.numpy as jnp
from jax.experimental import pallas as pl
from jax.experimental.pallas import tpu as pltpu


def _inverted_residual_kernel(
    x_ref,      # (1, N_sub*Cin, M)      packed input images (one image per sublane group)
    w1_ref,     # (N_sub*hidden, N_sub*Cin)   block-diag 1x1 expand weights, BN1 folded
    wdw_ref,    # (N_sub*hidden, 9)           3x3 depthwise taps (ky*3+kx), BN2 folded
    w3_ref,     # (N_sub*Cout, N_sub*hidden)  block-diag 1x1 project weights, BN3 folded
    bias_ref,   # (N_sub*hidden, 3)           col0=b1, col1=b2, col2=b3 (zero padded)
    mask_ref,   # (4, M)                      [col>0, col<W-1, row>0, row<H-1] as f32
    out_ref,    # (1, N_sub*Cout, M)
    *,
    W,
):
    M = x_ref.shape[2]            # lanes per image (= H*W); one image per sublane group
    Cp = out_ref.shape[1]         # packed output channels = N_sub * Cout

    x = x_ref[0]                  # (N_sub*Cin, M)
    w1 = w1_ref[...]
    wdw = wdw_ref[...]
    w3 = w3_ref[...]
    b1 = bias_ref[:, 0:1]         # (N_sub*hidden, 1) — broadcasts over lanes
    b2 = bias_ref[:, 1:2]
    b3 = bias_ref[:Cp, 2:3]       # (N_sub*Cout, 1)
    # Precomputed border masks, (1, M) each -> broadcast over sublanes (channels).
    m_w = mask_ref[0:1, :]        # col > 0      (west  neighbour valid, dx = -1)
    m_e = mask_ref[1:2, :]        # col < W - 1  (east  neighbour valid, dx = +1)
    m_n = mask_ref[2:3, :]        # row > 0      (north row       valid, dy = -1)
    m_s = mask_ref[3:4, :]        # row < H - 1  (south row       valid, dy = +1)

    # ---- 1x1 expand conv (+ folded BN) + ReLU6: one MXU matmul --------------------
    h = jnp.dot(w1, x, preferred_element_type=jnp.float32,
                precision=jax.lax.Precision.HIGHEST)
    h = jnp.clip(h + b1, 0.0, 6.0)                         # (N_sub*hidden, M)

    # ---- 3x3 depthwise conv (stride 1, pad 1): 4 XLU rolls + border masks ---------
    # Mask-by-multiply is safe because h is ReLU6-clipped (finite, no 0*Inf).
    h_w = pltpu.roll(h, 1, axis=1) * m_w                   # h[m-1]  (dx = -1), masked
    h_e = pltpu.roll(h, M - 1, axis=1) * m_e               # h[m+1]  (dx = +1), masked
    # dy = 0 row directly into the accumulator.
    acc = h_w * wdw[:, 3:4] + h * wdw[:, 4:5] + h_e * wdw[:, 5:6]
    # dy = -1 row: column-combined first, then a single +W roll and the row mask
    # (the roll commutes with the per-sublane taps and the column masks).
    row_n = h_w * wdw[:, 0:1] + h * wdw[:, 1:2] + h_e * wdw[:, 2:3]
    acc = acc + m_n * pltpu.roll(row_n, W, axis=1)         # row_n[m - W]
    # dy = +1 row.
    row_s = h_w * wdw[:, 6:7] + h * wdw[:, 7:8] + h_e * wdw[:, 8:9]
    acc = acc + m_s * pltpu.roll(row_s, M - W, axis=1)     # row_s[m + W]
    acc = jnp.clip(acc + b2, 0.0, 6.0)                     # (N_sub*hidden, M)

    # ---- 1x1 project conv (+ folded BN), residual ---------------------------------
    y = jnp.dot(w3, acc, preferred_element_type=jnp.float32,
                precision=jax.lax.Precision.HIGHEST)
    out_ref[0] = x + y + b3


def _fold_bn(gamma, beta, mean, var, eps=1e-5):
    scale = gamma / jnp.sqrt(var + eps)
    bias = beta - mean * scale
    return scale, bias


def inverted_residual_pallas(x_nchw, w1_t, bn1, wdw_t, bn2, w3_t, bn3, *, eps=1e-5):
    """x_nchw: (N, Cin, H, W) f32; PyTorch-shaped weights/BN params.

    w1_t:  (hidden, Cin, 1, 1)   1x1 expand conv
    wdw_t: (hidden, 1, 3, 3)     3x3 depthwise conv (groups=hidden)
    w3_t:  (Cout, hidden, 1, 1)  1x1 project conv
    bn*:   (gamma, beta, running_mean, running_var)
    """
    N, Cin, H, W = x_nchw.shape
    hidden = w1_t.shape[0]
    Cout = w3_t.shape[0]
    # Residual path of the reference module requires stride==1 and inp==oup.
    assert Cin == Cout, "InvertedResidual residual path requires inp == oup"
    assert Cout <= hidden
    # TODO(synk): stride == 2 path (F.pad(0,1,0,1) + strided depthwise) not implemented.

    s1, b1 = _fold_bn(*bn1, eps)
    s2, b2 = _fold_bn(*bn2, eps)
    s3, b3 = _fold_bn(*bn3, eps)

    # Fold BN scales into the conv weights (trace time, once).
    w1e = w1_t[:, :, 0, 0] * s1[:, None]                       # (hidden, Cin)
    wdwf = wdw_t[:, 0].reshape(hidden, 9) * s2[:, None]        # (hidden, 9)
    w3f = w3_t[:, :, 0, 0] * s3[:, None]                       # (Cout, hidden)

    # ---- pack N_sub images per grid step onto the sublane axis (pure reshapes) ----
    n_sub = max(1, 8 // Cin)
    while N % n_sub:
        n_sub -= 1                                             # falls back to 1
    G = N // n_sub
    M = H * W
    Cp_in = n_sub * Cin
    Cp_out = n_sub * Cout
    Hp = n_sub * hidden

    x_pack = x_nchw.reshape(G, Cp_in, M)                       # NCHW-contiguous reshape

    eye = jnp.eye(n_sub, dtype=jnp.float32)
    w1_blk = jnp.kron(eye, w1e)                                # (Hp, Cp_in)  block-diag
    w3_blk = jnp.kron(eye, w3f)                                # (Cp_out, Hp) block-diag
    wdw_blk = jnp.tile(wdwf, (n_sub, 1))                       # (Hp, 9)

    b1t = jnp.tile(b1, (n_sub,))
    b2t = jnp.tile(b2, (n_sub,))
    b3t = jnp.zeros((Hp,), jnp.float32).at[:Cp_out].set(jnp.tile(b3, (n_sub,)))
    bias = jnp.stack([b1t, b2t, b3t], axis=1)                  # (Hp, 3)

    # Border-validity masks, identical for every image / grid step.
    idx = jnp.arange(M, dtype=jnp.int32)
    col = idx % W
    row = idx // W
    masks = jnp.stack(
        [(col > 0), (col < W - 1), (row > 0), (row < H - 1)]
    ).astype(jnp.float32)                                      # (4, M)

    kernel = functools.partial(_inverted_residual_kernel, W=W)
    shared2 = lambda g: (0, 0)

    out = pl.pallas_call(
        kernel,
        out_shape=jax.ShapeDtypeStruct((G, Cp_out, M), jnp.float32),
        grid=(G,),
        in_specs=[
            pl.BlockSpec((1, Cp_in, M), lambda g: (g, 0, 0)),
            pl.BlockSpec((Hp, Cp_in), shared2),
            pl.BlockSpec((Hp, 9), shared2),
            pl.BlockSpec((Cp_out, Hp), shared2),
            pl.BlockSpec((Hp, 3), shared2),
            pl.BlockSpec((4, M), shared2),
        ],
        out_specs=pl.BlockSpec((1, Cp_out, M), lambda g: (g, 0, 0)),
        compiler_params=pltpu.CompilerParams(
            dimension_semantics=("parallel",)   # batch groups shard over TCs on v7x
        ),
    )(x_pack, w1_blk, wdw_blk, w3_blk, bias, masks)

    return out.reshape(N, Cout, H, W)


def _ref_forward_nchw(x, w1_t, bn1, wdw_t, bn2, w3_t, bn3, eps=1e-5):
    """Pure-JAX reference (NCHW, same math as the PyTorch module in eval mode)."""
    N, C, H, W = x.shape

    def bn(t, params):
        g, b, m, v = params
        sc = g / jnp.sqrt(v + eps)
        return t * sc[None, :, None, None] + (b - m * sc)[None, :, None, None]

    h = jnp.einsum("nchw,dc->ndhw", x, w1_t[:, :, 0, 0],
                   precision=jax.lax.Precision.HIGHEST)
    h = jnp.clip(bn(h, bn1), 0.0, 6.0)

    hp = jnp.pad(h, ((0, 0), (0, 0), (1, 1), (1, 1)))
    acc = jnp.zeros_like(h)
    for dy in range(3):
        for dx in range(3):
            acc = acc + hp[:, :, dy:dy + H, dx:dx + W] * \
                wdw_t[:, 0, dy, dx][None, :, None, None]
    acc = jnp.clip(bn(acc, bn2), 0.0, 6.0)

    y = jnp.einsum("nchw,dc->ndhw", acc, w3_t[:, :, 0, 0],
                   precision=jax.lax.Precision.HIGHEST)
    y = bn(y, bn3)
    return x + y


if __name__ == "__main__":
    # Module config: InvertedResidual(inp=4, oup=4, stride=1, expand_ratio=4)
    inp, oup, stride, expand_ratio = 4, 4, 1, 4
    hidden = int(round(inp * expand_ratio))
    assert stride == 1 and inp == oup  # residual path

    N, H, W = 2, 16, 16
    key = jax.random.PRNGKey(0)
    ks = jax.random.split(key, 16)

    # Input in PyTorch NCHW convention.
    x_nchw = jax.random.normal(ks[0], (N, inp, H, W), jnp.float32)

    # --- deterministic parameters (PyTorch shapes) ---
    # ConvBNReLU(inp -> hidden, kernel_size=1)
    w1_t = 0.2 * jax.random.normal(ks[1], (hidden, inp, 1, 1), jnp.float32)
    g1 = 1.0 + 0.1 * jax.random.normal(ks[2], (hidden,), jnp.float32)
    be1 = 0.1 * jax.random.normal(ks[3], (hidden,), jnp.float32)
    m1 = 0.1 * jax.random.normal(ks[4], (hidden,), jnp.float32)
    v1 = jnp.abs(jax.random.normal(ks[5], (hidden,), jnp.float32)) + 0.5

    # ConvBNReLU(hidden -> hidden, 3x3 depthwise, stride=1, groups=hidden)
    wdw_t = 0.2 * jax.random.normal(ks[6], (hidden, 1, 3, 3), jnp.float32)
    g2 = 1.0 + 0.1 * jax.random.normal(ks[7], (hidden,), jnp.float32)
    be2 = 0.1 * jax.random.normal(ks[8], (hidden,), jnp.float32)
    m2 = 0.1 * jax.random.normal(ks[9], (hidden,), jnp.float32)
    v2 = jnp.abs(jax.random.normal(ks[10], (hidden,), jnp.float32)) + 0.5

    # Conv2d(hidden -> oup, 1x1, bias=False) + BatchNorm2d(oup)
    w3_t = 0.2 * jax.random.normal(ks[11], (oup, hidden, 1, 1), jnp.float32)
    g3 = 1.0 + 0.1 * jax.random.normal(ks[12], (oup,), jnp.float32)
    be3 = 0.1 * jax.random.normal(ks[13], (oup,), jnp.float32)
    m3 = 0.1 * jax.random.normal(ks[14], (oup,), jnp.float32)
    v3 = jnp.abs(jax.random.normal(ks[15], (oup,), jnp.float32)) + 0.5

    bn1 = (g1, be1, m1, v1)
    bn2 = (g2, be2, m2, v2)
    bn3 = (g3, be3, m3, v3)

    out = inverted_residual_pallas(x_nchw, w1_t, bn1, wdw_t, bn2, w3_t, bn3)
    out = jax.block_until_ready(out)

    ref = _ref_forward_nchw(x_nchw, w1_t, bn1, wdw_t, bn2, w3_t, bn3)
    ref = jax.block_until_ready(ref)

    assert out.shape == (N, oup, H, W)
    err = float(jnp.max(jnp.abs(out - ref)))
    # Small slack over pure-f32 accumulation-order differences from BN folding /
    # MXU matmul pass ordering; real bugs (wrong tap / missing mask) are ~0.1+.
    assert err < 2e-3, f"max abs error {err}"

    print("KERNEL_OK")
</pallas_src>

<mosaic_0001>
module attributes {stable_mosaic.version = 11 : i64} {
  func.func @_inverted_residual_kernel(%arg0: i32, %arg1: memref<1x8x256xf32, #tpu.memory_space<vmem>>, %arg2: memref<32x8xf32, #tpu.memory_space<vmem>>, %arg3: memref<32x9xf32, #tpu.memory_space<vmem>>, %arg4: memref<8x32xf32, #tpu.memory_space<vmem>>, %arg5: memref<32x3xf32, #tpu.memory_space<vmem>>, %arg6: memref<4x256xf32, #tpu.memory_space<vmem>>, %arg7: memref<1x8x256xf32, #tpu.memory_space<vmem>>) attributes {dimension_semantics = [#tpu.dimension_semantics<parallel>], iteration_bounds = array<i64: 1>, scalar_prefetch = 0 : i64, scratch_operands = 0 : i64, tpu.core_type = #tpu.core_type<tc>, window_params = [{transform_indices = @transform_0, window_bounds = array<i64: 1, 8, 256>}, {pipeline_mode = #tpu.pipeline_mode<synchronous>, transform_indices = @transform_1, window_bounds = array<i64: 32, 8>}, {pipeline_mode = #tpu.pipeline_mode<synchronous>, transform_indices = @transform_2, window_bounds = array<i64: 32, 9>}, {pipeline_mode = #tpu.pipeline_mode<synchronous>, transform_indices = @transform_3, window_bounds = array<i64: 8, 32>}, {pipeline_mode = #tpu.pipeline_mode<synchronous>, transform_indices = @transform_4, window_bounds = array<i64: 32, 3>}, {pipeline_mode = #tpu.pipeline_mode<synchronous>, transform_indices = @transform_5, window_bounds = array<i64: 4, 256>}, {transform_indices = @transform_6, window_bounds = array<i64: 1, 8, 256>}]} {
    %c0 = arith.constant 0 : index
    %c0_0 = arith.constant 0 : index
    %c0_1 = arith.constant 0 : index
    %0 = vector.load %arg1[%c0, %c0_0, %c0_1] : memref<1x8x256xf32, #tpu.memory_space<vmem>>, vector<1x8x256xf32>
    %1 = vector.shape_cast %0 : vector<1x8x256xf32> to vector<8x256xf32>
    %c0_2 = arith.constant 0 : index
    %c0_3 = arith.constant 0 : index
    %2 = vector.load %arg2[%c0_2, %c0_3] : memref<32x8xf32, #tpu.memory_space<vmem>>, vector<32x8xf32>
    %c0_4 = arith.constant 0 : index
    %c0_5 = arith.constant 0 : index
    %3 = vector.load %arg3[%c0_4, %c0_5] : memref<32x9xf32, #tpu.memory_space<vmem>>, vector<32x9xf32>
    %c0_6 = arith.constant 0 : index
    %c0_7 = arith.constant 0 : index
    %4 = vector.load %arg4[%c0_6, %c0_7] : memref<8x32xf32, #tpu.memory_space<vmem>>, vector<8x32xf32>
    %c0_8 = arith.constant 0 : index
    %c0_9 = arith.constant 0 : index
    %5 = vector.load %arg5[%c0_8, %c0_9] : memref<32x3xf32, #tpu.memory_space<vmem>>, vector<32x1xf32>
    %c0_10 = arith.constant 0 : index
    %c1 = arith.constant 1 : index
    %6 = vector.load %arg5[%c0_10, %c1] : memref<32x3xf32, #tpu.memory_space<vmem>>, vector<32x1xf32>
    %c0_11 = arith.constant 0 : index
    %c2 = arith.constant 2 : index
    %7 = vector.load %arg5[%c0_11, %c2] : memref<32x3xf32, #tpu.memory_space<vmem>>, vector<8x1xf32>
    %c0_12 = arith.constant 0 : index
    %c0_13 = arith.constant 0 : index
    %8 = vector.load %arg6[%c0_12, %c0_13] : memref<4x256xf32, #tpu.memory_space<vmem>>, vector<1x256xf32>
    %c1_14 = arith.constant 1 : index
    %c0_15 = arith.constant 0 : index
    %9 = vector.load %arg6[%c1_14, %c0_15] : memref<4x256xf32, #tpu.memory_space<vmem>>, vector<1x256xf32>
    %c2_16 = arith.constant 2 : index
    %c0_17 = arith.constant 0 : index
    %10 = vector.load %arg6[%c2_16, %c0_17] : memref<4x256xf32, #tpu.memory_space<vmem>>, vector<1x256xf32>
    %c3 = arith.constant 3 : index
    %c0_18 = arith.constant 0 : index
    %11 = vector.load %arg6[%c3, %c0_18] : memref<4x256xf32, #tpu.memory_space<vmem>>, vector<1x256xf32>
    %cst = arith.constant dense<0.000000e+00> : vector<32x256xf32>
    %12 = tpu.matmul %2, %1, %cst {dimension_numbers = #tpu.dot_dimension_numbers<[1], [0], [0], [1], [0, 0, 1, 1], [], []>, precision = #tpu.contract_precision<fp32>} : vector<32x8xf32>, vector<8x256xf32>, vector<32x256xf32> -> vector<32x256xf32>
    %13 = vector.broadcast %5 : vector<32x1xf32> to vector<32x256xf32>
    %14 = arith.addf %12, %13 : vector<32x256xf32>
    %cst_19 = arith.constant 0.000000e+00 : f32
    %cst_20 = arith.constant 6.000000e+00 : f32
    %15 = vector.broadcast %cst_19 : f32 to vector<32x256xf32>
    %16 = arith.maximumf %15, %14 : vector<32x256xf32>
    %17 = vector.broadcast %cst_20 : f32 to vector<32x256xf32>
    %18 = arith.minimumf %17, %16 : vector<32x256xf32>
    %c1_i32 = arith.constant 1 : i32
    %19 = tpu.dynamic_rotate %18 by %c1_i32 dim 1 : vector<32x256xf32>, i32 -> vector<32x256xf32>
    %20 = vector.broadcast %8 : vector<1x256xf32> to vector<32x256xf32>
    %21 = arith.mulf %19, %20 : vector<32x256xf32>
    %c255_i32 = arith.constant 255 : i32
    %22 = tpu.dynamic_rotate %18 by %c255_i32 dim 1 : vector<32x256xf32>, i32 -> vector<32x256xf32>
    %23 = vector.broadcast %9 : vector<1x256xf32> to vector<32x256xf32>
    %24 = arith.mulf %22, %23 : vector<32x256xf32>
    %25 = vector.extract_strided_slice %3 {offsets = [0, 3], sizes = [32, 1], strides = [1, 1]} : vector<32x9xf32> to vector<32x1xf32>
    %26 = vector.broadcast %25 : vector<32x1xf32> to vector<32x256xf32>
    %27 = arith.mulf %21, %26 : vector<32x256xf32>
    %28 = vector.extract_strided_slice %3 {offsets = [0, 4], sizes = [32, 1], strides = [1, 1]} : vector<32x9xf32> to vector<32x1xf32>
    %29 = vector.broadcast %28 : vector<32x1xf32> to vector<32x256xf32>
    %30 = arith.mulf %18, %29 : vector<32x256xf32>
    %31 = arith.addf %27, %30 : vector<32x256xf32>
    %32 = vector.extract_strided_slice %3 {offsets = [0, 5], sizes = [32, 1], strides = [1, 1]} : vector<32x9xf32> to vector<32x1xf32>
    %33 = vector.broadcast %32 : vector<32x1xf32> to vector<32x256xf32>
    %34 = arith.mulf %24, %33 : vector<32x256xf32>
    %35 = arith.addf %31, %34 : vector<32x256xf32>
    %36 = vector.extract_strided_slice %3 {offsets = [0, 0], sizes = [32, 1], strides = [1, 1]} : vector<32x9xf32> to vector<32x1xf32>
    %37 = vector.broadcast %36 : vector<32x1xf32> to vector<32x256xf32>
    %38 = arith.mulf %21, %37 : vector<32x256xf32>
    %39 = vector.extract_strided_slice %3 {offsets = [0, 1], sizes = [32, 1], strides = [1, 1]} : vector<32x9xf32> to vector<32x1xf32>
    %40 = vector.broadcast %39 : vector<32x1xf32> to vector<32x256xf32>
    %41 = arith.mulf %18, %40 : vector<32x256xf32>
    %42 = arith.addf %38, %41 : vector<32x256xf32>
    %43 = vector.extract_strided_slice %3 {offsets = [0, 2], sizes = [32, 1], strides = [1, 1]} : vector<32x9xf32> to vector<32x1xf32>
    %44 = vector.broadcast %43 : vector<32x1xf32> to vector<32x256xf32>
    %45 = arith.mulf %24, %44 : vector<32x256xf32>
    %46 = arith.addf %42, %45 : vector<32x256xf32>
    %c16_i32 = arith.constant 16 : i32
    %47 = tpu.dynamic_rotate %46 by %c16_i32 dim 1 : vector<32x256xf32>, i32 -> vector<32x256xf32>
    %48 = vector.broadcast %10 : vector<1x256xf32> to vector<32x256xf32>
    %49 = arith.mulf %48, %47 : vector<32x256xf32>
    %50 = arith.addf %35, %49 : vector<32x256xf32>
    %51 = vector.extract_strided_slice %3 {offsets = [0, 6], sizes = [32, 1], strides = [1, 1]} : vector<32x9xf32> to vector<32x1xf32>
    %52 = vector.broadcast %51 : vector<32x1xf32> to vector<32x256xf32>
    %53 = arith.mulf %21, %52 : vector<32x256xf32>
    %54 = vector.extract_strided_slice %3 {offsets = [0, 7], sizes = [32, 1], strides = [1, 1]} : vector<32x9xf32> to vector<32x1xf32>
    %55 = vector.broadcast %54 : vector<32x1xf32> to vector<32x256xf32>
    %56 = arith.mulf %18, %55 : vector<32x256xf32>
    %57 = arith.addf %53, %56 : vector<32x256xf32>
    %58 = vector.extract_strided_slice %3 {offsets = [0, 8], sizes = [32, 1], strides = [1, 1]} : vector<32x9xf32> to vector<32x1xf32>
    %59 = vector.broadcast %58 : vector<32x1xf32> to vector<32x256xf32>
    %60 = arith.mulf %24, %59 : vector<32x256xf32>
    %61 = arith.addf %57, %60 : vector<32x256xf32>
    %c240_i32 = arith.constant 240 : i32
    %62 = tpu.dynamic_rotate %61 by %c240_i32 dim 1 : vector<32x256xf32>, i32 -> vector<32x256xf32>
    %63 = vector.broadcast %11 : vector<1x256xf32> to vector<32x256xf32>
    %64 = arith.mulf %63, %62 : vector<32x256xf32>
    %65 = arith.addf %50, %64 : vector<32x256xf32>
    %66 = vector.broadcast %6 : vector<32x1xf32> to vector<32x256xf32>
    %67 = arith.addf %65, %66 : vector<32x256xf32>
    %cst_21 = arith.constant 0.000000e+00 : f32
    %cst_22 = arith.constant 6.000000e+00 : f32
    %68 = vector.broadcast %cst_21 : f32 to vector<32x256xf32>
    %69 = arith.maximumf %68, %67 : vector<32x256xf32>
    %70 = vector.broadcast %cst_22 : f32 to vector<32x256xf32>
    %71 = arith.minimumf %70, %69 : vector<32x256xf32>
    %cst_23 = arith.constant dense<0.000000e+00> : vector<8x256xf32>
    %72 = tpu.matmul %4, %71, %cst_23 {dimension_numbers = #tpu.dot_dimension_numbers<[1], [0], [0], [1], [0, 0, 1, 1], [], []>, precision = #tpu.contract_precision<fp32>} : vector<8x32xf32>, vector<32x256xf32>, vector<8x256xf32> -> vector<8x256xf32>
    %73 = arith.addf %1, %72 : vector<8x256xf32>
    %74 = vector.broadcast %7 : vector<8x1xf32> to vector<8x256xf32>
    %75 = arith.addf %73, %74 : vector<8x256xf32>
    %c0_24 = arith.constant 0 : index
    %c0_25 = arith.constant 0 : index
    %c0_26 = arith.constant 0 : index
    %76 = vector.load %arg7[%c0_24, %c0_25, %c0_26] : memref<1x8x256xf32, #tpu.memory_space<vmem>>, vector<1x8x256xf32>
    %77 = vector.shape_cast %76 : vector<1x8x256xf32> to vector<8x256xf32>
    %78 = vector.shape_cast %75 : vector<8x256xf32> to vector<1x8x256xf32>
    tpu.vector_store %arg7[%c0_24, %c0_25, %c0_26], %78 {strides = array<i32>} : memref<1x8x256xf32, #tpu.memory_space<vmem>>, vector<1x8x256xf32>,
    return
  }
  func.func @transform_0(%arg0: i32) -> (i32, i32, i32) {
    %c0_i32 = arith.constant 0 : i32
    %c0_i32_0 = arith.constant 0 : i32
    %c0_i32_1 = arith.constant 0 : i32
    return %arg0, %c0_i32, %c0_i32_0 : i32, i32, i32
  }
  func.func @transform_1(%arg0: i32) -> (i32, i32) {
    %c0_i32 = arith.constant 0 : i32
    %c0_i32_0 = arith.constant 0 : i32
    %c0_i32_1 = arith.constant 0 : i32
    return %c0_i32, %c0_i32_0 : i32, i32
  }
  func.func @transform_2(%arg0: i32) -> (i32, i32) {
    %c0_i32 = arith.constant 0 : i32
    %c0_i32_0 = arith.constant 0 : i32
    %c0_i32_1 = arith.constant 0 : i32
    return %c0_i32, %c0_i32_0 : i32, i32
  }
  func.func @transform_3(%arg0: i32) -> (i32, i32) {
    %c0_i32 = arith.constant 0 : i32
    %c0_i32_0 = arith.constant 0 : i32
    %c0_i32_1 = arith.constant 0 : i32
    return %c0_i32, %c0_i32_0 : i32, i32
  }
  func.func @transform_4(%arg0: i32) -> (i32, i32) {
    %c0_i32 = arith.constant 0 : i32
    %c0_i32_0 = arith.constant 0 : i32
    %c0_i32_1 = arith.constant 0 : i32
    return %c0_i32, %c0_i32_0 : i32, i32
  }
  func.func @transform_5(%arg0: i32) -> (i32, i32) {
    %c0_i32 = arith.constant 0 : i32
    %c0_i32_0 = arith.constant 0 : i32
    %c0_i32_1 = arith.constant 0 : i32
    return %c0_i32, %c0_i32_0 : i32, i32
  }
  func.func @transform_6(%arg0: i32) -> (i32, i32, i32) {
    %c0_i32 = arith.constant 0 : i32
    %c0_i32_0 = arith.constant 0 : i32
    %c0_i32_1 = arith.constant 0 : i32
    return %arg0, %c0_i32, %c0_i32_0 : i32, i32, i32
  }
}

</mosaic_0001>

<bundles_post_ra>
// kernel: tpu_custom_call.1
= control target key start
LH: loop header
LB: loop body
LE: loop exit
PB: predicated region body
PF: predicated region fallthrough
CT: control target
= control target key end

     0   :  { %vm66_vm0 = vcmask 64512   ;;  %v2672_v5 = vmov 0.0   ;;  %v1855_v14 = vmov 0   ;;  %s2665_s0 = inlined_call_operand.vmem [shape: f32[1,8,256], index: 0, kind: input, shape index: {}]   ;;  %s2666_s1 = inlined_call_operand.vmem [shape: f32[32,8], index: 1, kind: input, shape index: {}]   ;;  %s2667_s2 = inlined_call_operand.vmem [shape: f32[32,9], index: 2, kind: input, shape index: {}]   ;;  %s2668_s3 = inlined_call_operand.vmem [shape: f32[8,32], index: 3, kind: input, shape index: {}]   ;;  %s2669_s4 = inlined_call_operand.vmem [shape: f32[32,3], index: 4, kind: input, shape index: {}]   ;;  %s2670_s5 = inlined_call_operand.vmem [shape: f32[4,256], index: 5, kind: input, shape index: {}]   ;;  %s2671_s6 = inlined_call_operand.hbm [shape: f32[1,8,256], index: 6, kind: output, shape index: {}]  }
   0x1   :  { %v25_v0 = vld [vmem:[%s2665_s0 + $0x8] sm:$0xff]  ;;  %v24_v1 = vld [vmem:[%s2665_s0] sm:$0xff]  ;;  %145 = vmatprep.mubr.f32.mxu0 %v2672_v5  ;;  %264 = vmatprep.mubr.f32.mxu1 %v2672_v5  ;;  %v28_v8 = vld [vmem:[%s2666_s1 + $0x10] sm:$0xff] }
   0x2   :  { %v26_v2 = vld [vmem:[%s2666_s1] sm:$0xff]  ;;  %v1913_v3 = vand.u32 4294901760, %v25_v0  ;;  %v1915_v4 = vand.u32 4294901760, %v24_v1  ;;  %v27_v7 = vld [vmem:[%s2666_s1 + $0x8] sm:$0xff]  ;;  %v29_v9 = vld [vmem:[%s2666_s1 + $0x18] sm:$0xff]  ;;  %v74_v12 = vsel %vm66_vm0, %v28_v8, 0  ;;  %1799 = vset.pattern.permute.xlu1 %v1855_v14  ;;  %1798 = vset.pattern.permute.xlu0 %v1855_v14 }
   0x3   :  { %v68_v6 = vsel %vm66_vm0, %v26_v2, 0  ;;  %v71_v11 = vsel %vm66_vm0, %v27_v7, 0  ;;  %v77_v13 = vsel %vm66_vm0, %v29_v9, 0  ;;  %v36_v15 = vld [vmem:[%s2669_s4 + $0x8] sm:$0xff]  ;;  %v1940_v19 = vand.u32 4294901760, %v74_v12  ;;  %v1951_v22 = vld [vmem:[%s2669_s4] sm:$0xff] }
   0x4   :  { %v1928_v10 = vand.u32 4294901760, %v68_v6  ;;  %110 = vmatprep.subr.mxu0 %v1913_v3  ;;  %v221_v16 = vsub.f32 %v25_v0, %v1913_v3  ;;  %v1936_v17 = vsub.f32 %v24_v1, %v1915_v4  ;;  %v1938_v18 = vand.u32 4294901760, %v71_v11  ;;  %53 = vperm.xlu1 %1799, %v36_v15   ;;  %2690 = vst [vmem:[#allocation5_spill] sm:$0xff] %v1951_v22  ;;  %v1956_v23 = vld [vmem:[%s2669_s4 + $0x18] sm:$0xff] }
   0x5   :  { %112 = vmatpush1.msra.mxu0 %v1915_v4  ;;  %v1946_v21 = vand.u32 4294901760, %v77_v13  ;;  %v1963_v27 = vsub.f32 %v74_v12, %v1940_v19  ;;  %63 = vperm.xlu0 %1798, %v1956_v23  }
   0x6   :  { %v1944_v20 = vsub.f32 %v68_v6, %v1928_v10  ;;  %v222_v24 = vand.u32 4294901760, %v221_v16  ;;  %v228_v25 = vand.u32 4294901760, %v1936_v17  ;;  %325 = vmatprep.subr.mxu0 %v221_v16  ;;  %v1960_v26 = vsub.f32 %v71_v11, %v1938_v18 }
   0x7   :  { %11 = vsyncpa [#allocation3], 0  ;;  %v1970_v29 = vld [vmem:[%s2669_s4 + $0x10] sm:$0xff]  ;;  %v170_v34 = vand.u32 4294901760, %v1963_v27  ;;  %v1980_v35 = vsub.f32 %v77_v13, %v1946_v21  ;;  %v1856_v40 = vmov 1   ;;  %v1999_v46 = vld [vmem:[%s2667_s2 + $0x18] sm:$0xff] }
   0x8   :  { %v148_v28 = vand.u32 4294901760, %v1944_v20  ;;  %v223_v30 = vsub.f32 %v221_v16, %v222_v24  ;;  %v229_v31 = vsub.f32 %v1936_v17, %v228_v25  ;;  %v159_v32 = vand.u32 4294901760, %v1960_v26  ;;  %48 = vperm.xlu1 %1799, %v1951_v22   ;;  %v2010_v48 = vld [vmem:[%s2667_s2 + $0x10] sm:$0xff]  ;;  %v2023_v49 = vld [vmem:[%s2667_s2 + $0x8] sm:$0xff]  ;;  %v2036_v51 = vld [vmem:[%s2667_s2] sm:$0xff]  ;;  %s1862_s2 = smov 1  }
   0x9   :  { %58 = vperm.xlu0 %1798, %v1970_v29   ;;  %v171_v42 = vsub.f32 %v1963_v27, %v170_v34  ;;  %v181_v43 = vand.u32 4294901760, %v1980_v35  ;;  %v1857_v50 = vmov 6   ;;  %v1858_v52 = vmov 7   ;;  %s1863_s24 = smov 127   ;;  %s1866_s29 = smov 16  }
   0xa   :  { %v149_v33 = vsub.f32 %v1944_v20, %v148_v28  ;;  %v224_v36 = vand.u32 4294901760, %v223_v30  ;;  %v230_v37 = vand.u32 4294901760, %v229_v31  ;;  %v160_v38 = vsub.f32 %v1960_v26, %v159_v32  ;;  %s1867_s30 = smov 112   ;;  %s1868_s15 = smov [#allocation2]  }
   0xb   :  { %v172_v44 = vand.u32 4294901760, %v171_v42  ;;  %v182_v45 = vsub.f32 %v1980_v35, %v181_v43  ;;  %v2674_v53 = vmov 2   ;;  %v1860_v54 = vmov 8   ;;  %s1772_s16 = sshll.u32 %s1868_s15, 4  ;;  %s1773_s16 = int_to_ptr.vmem [resolvable:$true] %s1772_s16 }
   0xc   :  { %v150_v39 = vand.u32 4294901760, %v149_v33  ;;  %225 = vmatprep.subr.mxu1 %v224_v36  ;;  %1800 = vset.pattern.permute.xlu1 %v1856_v40  ;;  %v161_v41 = vand.u32 4294901760, %v160_v38  ;;  %v1861_v55 = vmov 3   ;;  %vm1209_vm5 = vcmask 261120   ;;  %s1832_s19 = scalar_lea.vmem %s1773_s16, 256  ;;  %p1837_p1 = scmp.lt.s32.totalorder %s1773_s16, %s1773_s16 }
   0xd   :  { %231 = vmatpush1.msra.mxu1 %v230_v37  ;;  %926 = vperm.xlu1 %1800, %v1999_v46   ;;  %v183_v47 = vand.u32 4294901760, %v182_v45  ;;  %p1833_p0 = scmp.ne.s32.totalorder %s1773_s16, %s1832_s19  ;;  %p1838_p2 = scmp.lt.s32.totalorder %s1832_s19, %s1832_s19 }
   0xe   :  { %151 = vmatmul.mubr.f32.vlgmr.msra.gmra.mxu0 %v150_v39  ;;  %266 = vmatmul.mubr.f32.vlgmr.msra.gmra.mxu1 %v1928_v10 }
   0xf   :  { %328 = vmatpush1.msra.mxu0 %v1936_v17  ;;  %156 = vmatprep.mubr.f32.mxu0 %v2672_v5  ;;  %p1839_p3 = por %p1838_p2, %p1837_p1 }
  0x10   :  { %425 = vmatprep.subr.mxu1 %v1913_v3  ;;  %271 = vmatprep.mubr.f32.mxu1 %v2672_v5 }
  0x11   :  { %427 = vmatpush1.msra.mxu1 %v1915_v4  ;;  %530 = vmatprep.subr.mxu0 %v222_v24  ;;  %p1840_p4 = pnand %p1839_p3, %p1833_p0 }
  0x12   :  { %162 = vmatmul.mubr.f32.gmra.mxu0 %v161_v41  ;;  %273 = vmatmul.mubr.f32.gmra.mxu1 %v1938_v18 }
  0x13   :  { %167 = vmatprep.mubr.f32.mxu0 %v2672_v5  ;;  %278 = vmatprep.mubr.f32.mxu1 %v2672_v5 }
  0x14   :  { %627 = vmatprep.subr.mxu1 %v1913_v3  ;;  %902 = vperm.xlu0 %1798, %v1999_v46  }
  0x15   :  { %922 = vperm.xlu1 %1800, %v2010_v48  }
  0x16   :  { %173 = vmatmul.mubr.f32.gmra.mxu0 %v172_v44  ;;  %280 = vmatmul.mubr.f32.gmra.mxu1 %v1940_v19 }
  0x17   :  { %178 = vmatprep.mubr.f32.mxu0 %v2672_v5  ;;  %285 = vmatprep.mubr.f32.mxu1 %v2672_v5 }
  0x18   :  { %898 = vperm.xlu0 %1798, %v2010_v48  }
  0x19   :  { %1801 = vset.pattern.permute.xlu1 %v1857_v50 }
  0x1a   :  { %184 = vmatmul.mubr.f32.gmra.mxu0 %v183_v47  ;;  %287 = vmatmul.mubr.f32.gmra.mxu1 %v1946_v21 }
  0x1b   :  { %361 = vmatprep.mubr.f32.mxu0 %v2672_v5  ;;  %460 = vmatprep.mubr.f32.mxu1 %v2672_v5 }
  0x1c   :  { %894 = vperm.xlu0 %1798, %v2023_v49   ;;  %1042 = vperm.xlu1 %1801, %v1999_v46  }
  0x1e   :  { %364 = vmatmul.mubr.f32.vlgmr.msra.gmra.mxu0 %v1944_v20  ;;  %464 = vmatmul.mubr.f32.vlgmr.msra.gmra.mxu1 %v148_v28 }
  0x1f   :  { %534 = vmatpush1.msra.mxu0 %v228_v25  ;;  %369 = vmatprep.mubr.f32.mxu0 %v2672_v5 }
  0x20   :  { %469 = vmatprep.mubr.f32.mxu1 %v2672_v5  ;;  %629 = vmatpush1.msra.mxu1 %v1915_v4 }
  0x21   :  { %890 = vperm.xlu0 %1798, %v2036_v51   ;;  %1802 = vset.pattern.permute.xlu1 %v1858_v52 }
  0x22   :  { %372 = vmatmul.mubr.f32.gmra.mxu0 %v1960_v26  ;;  %473 = vmatmul.mubr.f32.gmra.mxu1 %v159_v32 }
  0x23   :  { %377 = vmatprep.mubr.f32.mxu0 %v2672_v5  ;;  %478 = vmatprep.mubr.f32.mxu1 %v2672_v5 }
  0x24   :  { %1066 = vperm.xlu1 %1802, %v1999_v46  }
  0x25   :  { %1807 = vset.pattern.permute.xlu0 %v1857_v50 }
  0x26   :  { %380 = vmatmul.mubr.f32.gmra.mxu0 %v1963_v27  ;;  %1038 = vperm.xlu0 %1807, %v2010_v48  }
  0x27   :  { %482 = vmatmul.mubr.f32.gmra.mxu1 %v170_v34  ;;  %385 = vmatprep.mubr.f32.mxu0 %v2672_v5 }
  0x28   :  { %487 = vmatprep.mubr.f32.mxu1 %v2672_v5  ;;  %1803 = vset.pattern.permute.xlu1 %v1856_v40 }
  0x29   :  { %918 = vperm.xlu1 %1803, %v2023_v49  }
  0x2a   :  { %388 = vmatmul.mubr.f32.gmra.mxu0 %v1980_v35  ;;  %1034 = vperm.xlu0 %1807, %v2023_v49  }
  0x2b   :  { %491 = vmatmul.mubr.f32.gmra.mxu1 %v181_v43  ;;  %567 = vmatprep.mubr.f32.mxu0 %v2672_v5 }
  0x2c   :  { %662 = vmatprep.mubr.f32.mxu1 %v2672_v5 }
  0x2d   :  { %1804 = vset.pattern.permute.xlu1 %v2674_v53 }
  0x2e   :  { %569 = vmatmul.mubr.f32.vlgmr.msra.gmra.mxu0 %v1928_v10  ;;  %954 = vperm.xlu1 %1804, %v2010_v48  }
  0x2f   :  { %664 = vmatmul.mubr.f32.vlgmr.msra.gmra.mxu1 %v1928_v10  ;;  %574 = vmatprep.mubr.f32.mxu0 %v2672_v5 }
  0x30   :  { %669 = vmatprep.mubr.f32.mxu1 %v2672_v5  ;;  %1810 = vset.pattern.permute.xlu0 %v2674_v53 }
  0x31   :  { %958 = vperm.xlu0 %1810, %v1999_v46  }
  0x32   :  { %576 = vmatmul.mubr.f32.gmra.mxu0 %v1938_v18  ;;  %1805 = vset.pattern.permute.xlu1 %v1858_v52 }
  0x33   :  { %671 = vmatmul.mubr.f32.gmra.mxu1 %v1938_v18  ;;  %581 = vmatprep.mubr.f32.mxu0 %v2672_v5 }
  0x34   :  { %676 = vmatprep.mubr.f32.mxu1 %v2672_v5  ;;  %1062 = vperm.xlu1 %1805, %v2010_v48  }
  0x35   :  { %946 = vperm.xlu0 %1810, %v2036_v51  }
  0x36   :  { %583 = vmatmul.mubr.f32.gmra.mxu0 %v1940_v19 }
  0x37   :  { %678 = vmatmul.mubr.f32.gmra.mxu1 %v1940_v19  ;;  %588 = vmatprep.mubr.f32.mxu0 %v2672_v5 }
  0x38   :  { %683 = vmatprep.mubr.f32.mxu1 %v2672_v5  ;;  %1806 = vset.pattern.permute.xlu1 %v1860_v54 }
  0x39   :  { %1098 = vperm.xlu1 %1806, %v1999_v46   ;;  %1815 = vset.pattern.permute.xlu0 %v1860_v54 }
  0x3a   :  { %590 = vmatmul.mubr.f32.gmra.mxu0 %v1946_v21 }
  0x3b   :  { %685 = vmatmul.mubr.f32.gmra.mxu1 %v1946_v21  ;;  %1285 = vmatprep.mubr.f32.mxu0 %v2672_v5 }
  0x3c   :  { %1401 = vmatprep.mubr.f32.mxu1 %v2672_v5 }
  0x3d   :  { %1808 = vset.pattern.permute.xlu1 %v1856_v40 }
  0x3e   :  { %914 = vperm.xlu1 %1808, %v2036_v51  }
  0x42   :  { %1809 = vset.pattern.permute.xlu1 %v2674_v53 }
  0x43   :  { %950 = vperm.xlu1 %1809, %v2023_v49  }
  0x47   :  { %1811 = vset.pattern.permute.xlu1 %v1858_v52 }
  0x48   :  { %1058 = vperm.xlu1 %1811, %v2023_v49  }
  0x4c   :  { %1812 = vset.pattern.permute.xlu1 %v1860_v54 }
  0x4d   :  { %1094 = vperm.xlu1 %1812, %v2010_v48  }
  0x51   :  { %1813 = vset.pattern.permute.xlu1 %v1857_v50 }
  0x52   :  { %1030 = vperm.xlu1 %1813, %v2036_v51  }
  0x56   :  { %1814 = vset.pattern.permute.xlu1 %v1858_v52 }
  0x57   :  { %1054 = vperm.xlu1 %1814, %v2036_v51  }
  0x5b   :  { %1816 = vset.pattern.permute.xlu1 %v1861_v55 }
  0x7f   :  { %v54_v7 = vpop.permute.xlu1 %53 }
  0x80   :  { %v64_v17 = vpop.permute.xlu0 %63 }
  0x83   :  { %v49_v14 = vpop.permute.xlu1 %48 }
  0x84   :  { %v59_v32 = vpop.permute.xlu0 %58 }
  0xce   :  { %v152_v56 = vpop.f32.mrf.mxu0  ;;  %v267_v57 = vpop.f32.mrf.mxu1 }
  0xcf   :  { %v153_v16 = vadd.f32 %v152_v56, %v49_v14 }
  0xd0   :  { %v154_v58 = vpop.f32.mrf.mxu0  ;;  %v269_v59 = vpop.f32.mrf.mxu1 }
  0xd1   :  { %v155_v20 = vadd.f32 %v154_v58, %v49_v14  ;;  %v268_v25 = vadd.f32 %v267_v57, %v153_v16 }
  0xd2   :  { %v163_v60 = vpop.f32.mrf.mxu0  ;;  %v274_v61 = vpop.f32.mrf.mxu1 }
  0xd3   :  { %v164_v26 = vadd.f32 %v163_v60, %v54_v7  ;;  %v270_v30 = vadd.f32 %v269_v59, %v155_v20 }
  0xd4   :  { %v165_v62 = vpop.f32.mrf.mxu0  ;;  %v276_v63 = vpop.f32.mrf.mxu1 }
  0xd5   :  { %v166_v31 = vadd.f32 %v165_v62, %v54_v7  ;;  %v275_v36 = vadd.f32 %v274_v61, %v164_v26 }
  0xd6   :  { %v174_v0 = vpop.f32.mrf.mxu0  ;;  %v281_v1 = vpop.f32.mrf.mxu1 }
  0xd7   :  { %v175_v39 = vadd.f32 %v174_v0, %v59_v32  ;;  %v277_v43 = vadd.f32 %v276_v63, %v166_v31 }
  0xd8   :  { %v176_v2 = vpop.f32.mrf.mxu0  ;;  %v283_v3 = vpop.f32.mrf.mxu1 }
  0xd9   :  { %v177_v41 = vadd.f32 %v176_v2, %v59_v32  ;;  %v282_v58 = vadd.f32 %v281_v1, %v175_v39 }
  0xda   :  { %v185_v4 = vpop.f32.mrf.mxu0  ;;  %v288_v6 = vpop.f32.mrf.mxu1 }
  0xdb   :  { %v284_v59 = vadd.f32 %v283_v3, %v177_v41  ;;  %v186_v60 = vadd.f32 %v185_v4, %v64_v17 }
  0xdc   :  { %v2090_v8 = vpop.f32.mrf.mxu0  ;;  %v2092_v9 = vpop.f32.mrf.mxu1 }
  0xde   :  { %v365_v10 = vpop.f32.mrf.mxu0  ;;  %v465_v11 = vpop.f32.mrf.mxu1 }
  0xdf   :  { %v366_v33 = vadd.f32 %v365_v10, %v268_v25 }
  0xe0   :  { %v367_v12 = vpop.f32.mrf.mxu0  ;;  %v467_v13 = vpop.f32.mrf.mxu1 }
  0xe1   :  { %v368_v37 = vadd.f32 %v367_v12, %v270_v30  ;;  %v466_v44 = vadd.f32 %v465_v11, %v366_v33 }
  0xe2   :  { %v373_v15 = vpop.f32.mrf.mxu0  ;;  %v474_v18 = vpop.f32.mrf.mxu1 }
  0xe3   :  { %v374_v45 = vadd.f32 %v373_v15, %v275_v36  ;;  %v468_v52 = vadd.f32 %v467_v13, %v368_v37  ;;  %v289_v13 = vadd.f32 %v288_v6, %v186_v60 }
  0xe4   :  { %v375_v19 = vpop.f32.mrf.mxu0  ;;  %v476_v21 = vpop.f32.mrf.mxu1 }
  0xe5   :  { %v376_v54 = vadd.f32 %v375_v19, %v277_v43  ;;  %v475_v61 = vadd.f32 %v474_v18, %v374_v45  ;;  %v188_v18 = vadd.f32 %v2090_v8, %v64_v17 }
  0xe6   :  { %v381_v24 = vpop.f32.mrf.mxu0 }
  0xe7   :  { %v483_v27 = vpop.f32.mrf.mxu1  ;;  %v382_v2 = vadd.f32 %v381_v24, %v282_v58  ;;  %v477_v11 = vadd.f32 %v476_v21, %v376_v54 }
  0xe8   :  { %v383_v28 = vpop.f32.mrf.mxu0 }
  0xe9   :  { %v485_v34 = vpop.f32.mrf.mxu1  ;;  %v384_v12 = vadd.f32 %v383_v28, %v284_v59  ;;  %v484_v30 = vadd.f32 %v483_v27, %v382_v2  ;;  %v2140_v2 = vpop.permute.xlu1 %926 }
  0xea   :  { %v389_v35 = vpop.f32.mrf.mxu0 }
  0xeb   :  { %v492_v38 = vpop.f32.mrf.mxu1  ;;  %v486_v31 = vadd.f32 %v485_v34, %v384_v12  ;;  %v390_v28 = vadd.f32 %v389_v35, %v289_v13  ;;  %v291_v34 = vadd.f32 %v2092_v9, %v188_v18  ;;  %v1864_v12 = vmov 5  }
  0xec   :  { %v391_v42 = vpop.f32.mrf.mxu0 }
  0xed   :  { %v2094_v47 = vpop.f32.mrf.mxu1  ;;  %v493_v35 = vadd.f32 %v492_v38, %v390_v28 }
  0xee   :  { %v570_v50 = vpop.f32.mrf.mxu0 }
  0xef   :  { %v571_v56 = vadd.f32 %v570_v50, %v466_v44  ;;  %v665_v57 = vpop.f32.mrf.mxu1  ;;  %v392_v50 = vadd.f32 %v391_v42, %v291_v34  ;;  %v39_v34 = vld [vmem:[%s2670_s5] ss:$4 sm:$0x3] }
  0xf0   :  { %v572_v62 = vpop.f32.mrf.mxu0 }
  0xf1   :  { %v666_v7 = vadd.f32 %v665_v57, %v571_v56  ;;  %v573_v10 = vadd.f32 %v572_v62, %v468_v52  ;;  %v667_v0 = vpop.f32.mrf.mxu1  ;;  %v495_v9 = vadd.f32 %v2094_v47, %v392_v50 }
  0xf2   :  { %v577_v63 = vpop.f32.mrf.mxu0 }
  0xf3   :  { %v691_v14 = vmax.f32 %v666_v7, 0.0  ;;  %v668_v15 = vadd.f32 %v667_v0, %v573_v10  ;;  %v578_v16 = vadd.f32 %v577_v63, %v475_v61  ;;  %v672_v20 = vpop.f32.mrf.mxu1  ;;  %v2145_v63 = vpop.permute.xlu1 %922 }
  0xf4   :  { %v579_v19 = vpop.f32.mrf.mxu0 }
  0xf5   :  { %v2096_v25 = vmin.f32 %v691_v14, 6.0  ;;  %v692_v1 = vmax.f32 %v668_v15, 0.0  ;;  %v673_v3 = vadd.f32 %v672_v20, %v578_v16  ;;  %v580_v4 = vadd.f32 %v579_v19, %v477_v11  ;;  %v674_v26 = vpop.f32.mrf.mxu1 }
  0xf6   :  { %v584_v24 = vpop.f32.mrf.mxu0  ;;  %v1865_v11 = vmov 4  }
  0xf7   :  { %2691 = vst [vmem:[#allocation6_spill] sm:$0xff] %v2096_v25  ;;  %v2099_v32 = vmin.f32 %v692_v1, 6.0  ;;  %v693_v21 = vmax.f32 %v673_v3, 0.0  ;;  %v675_v33 = vadd.f32 %v674_v26, %v580_v4  ;;  %707 = vrot.lane.b32.xlu0 %v2096_v25, %s1862_s2  ;;  %v679_v6 = vpop.f32.mrf.mxu1  ;;  %v585_v36 = vadd.f32 %v584_v24, %v484_v30  ;;  %v2149_v14 = vpop.permute.xlu1 %1042 }
  0xf8   :  { %v586_v37 = vpop.f32.mrf.mxu0 }
  0xf9   :  { %2692 = vst [vmem:[#allocation7_spill] sm:$0xff] %v2099_v32  ;;  %v2103_v39 = vmin.f32 %v693_v21, 6.0  ;;  %v694_v41 = vmax.f32 %v675_v33, 0.0  ;;  %v587_v43 = vadd.f32 %v586_v37, %v486_v31  ;;  %715 = vrot.lane.b32.xlu1 %v2099_v32, %s1862_s2  ;;  %v681_v8 = vpop.f32.mrf.mxu1  ;;  %v680_v17 = vadd.f32 %v679_v6, %v585_v36 }
  0xfa   :  { %v591_v27 = vpop.f32.mrf.mxu0  ;;  %v723_v36 = vlaneseq }
  0xfb   :  { %2693 = vst [vmem:[#allocation8_spill] sm:$0xff] %v2103_v39  ;;  %v2108_v44 = vmin.f32 %v694_v41, 6.0  ;;  %v682_v45 = vadd.f32 %v681_v8, %v587_v43  ;;  %709 = vrot.lane.b32.xlu0 %v2103_v39, %s1862_s2  ;;  %v695_v52 = vmax.f32 %v680_v17, 0.0  ;;  %v592_v54 = vadd.f32 %v591_v27, %v493_v35  ;;  %v686_v56 = vpop.f32.mrf.mxu1  ;;  %v2155_v15 = vpop.permute.xlu1 %1066 }
  0xfc   :  { %v593_v58 = vpop.f32.mrf.mxu0  ;;  %v736_v43 = vshrl.u32 %v723_v36, 7  ;;  %v2197_v8 = vand.u32 127, %v723_v36 }
  0xfd   :  { %717 = vrot.lane.b32.xlu1 %v2108_v44, %s1862_s2  ;;  %v696_v57 = vmax.f32 %v682_v45, 0.0  ;;  %v2116_v38 = vmin.f32 %v695_v52, 6.0  ;;  %v687_v59 = vadd.f32 %v686_v56, %v592_v54  ;;  %v594_v42 = vadd.f32 %v593_v58, %v495_v9  ;;  %v688_v62 = vpop.f32.mrf.mxu1 }
  0xfe   :  { %v2201_v27 = vsub.s32 1, %v736_v43  ;;  %vm725_vm1 = vcmp.lt.s32.totalorder %v2197_v8, 1  ;;  %v2209_v45 = vsub.s32 0, %v736_v43  ;;  %vm769_vm2 = vcmp.lt.s32.totalorder %v2197_v8, 127 }
  0xff   :  { %755 = vrot.lane.b32.xlu0 %v2103_v39, %s1863_s24  ;;  %v2119_v60 = vmin.f32 %v696_v57, 6.0  ;;  %v697_v61 = vmax.f32 %v687_v59, 0.0  ;;  %v689_v7 = vadd.f32 %v688_v62, %v594_v42  ;;  %v2161_v16 = vpop.permute.xlu1 %918  ;;  %v1780_v42 = vld [vmem:[%s2670_s5 + $0x1] ss:$4 sm:$0x3]  ;;  %vm993_vm3 = vcmp.lt.s32.totalorder %v2197_v8, 16 }
 0x100   :  { %2695 = vst [vmem:[#allocation10_spill] sm:$0xff] %v2201_v27  ;;  %2696 = vst [vmem:[#allocation11_spill] sm:$0xff] %v2209_v45  ;;  %v2212_v52 = vrot.slane %v39_v34, %v2201_v27  ;;  %v2217_v56 = vrot.slane %v39_v34, %v2209_v45  ;;  %vm1133_vm4 = vcmp.lt.s32.totalorder %v2197_v8, 112 }
 0x101   :  { %763 = vrot.lane.b32.xlu1 %v2108_v44, %s1863_s24  ;;  %v2126_v47 = vmin.f32 %v697_v61, 6.0  ;;  %v698_v10 = vmax.f32 %v689_v7, 0.0 }
 0x103   :  { %711 = vrot.lane.b32.xlu0 %v2116_v38, %s1862_s2  ;;  %v2132_v0 = vmin.f32 %v698_v10, 6.0 }
 0x105   :  { %719 = vrot.lane.b32.xlu1 %v2119_v60, %s1862_s2 }
 0x107   :  { %757 = vrot.lane.b32.xlu0 %v2116_v38, %s1863_s24 }
 0x109   :  { %765 = vrot.lane.b32.xlu1 %v2119_v60, %s1863_s24 }
 0x10b   :  { %713 = vrot.lane.b32.xlu0 %v2126_v47, %s1862_s2 }
 0x10d   :  { %753 = vrot.lane.b32.xlu1 %v2096_v25, %s1863_s24 }
 0x10f   :  { %759 = vrot.lane.b32.xlu0 %v2126_v47, %s1863_s24 }
 0x111   :  { %721 = vrot.lane.b32.xlu1 %v2132_v0, %s1862_s2 }
 0x113   :  { %1090 = vperm.xlu0 %1815, %v2023_v49  }
 0x115   :  { %767 = vrot.lane.b32.xlu1 %v2132_v0, %s1863_s24 }
 0x117   :  { %1086 = vperm.xlu0 %1815, %v2036_v51  }
 0x119   :  { %761 = vrot.lane.b32.xlu1 %v2099_v32, %s1863_s24 }
 0x11b   :  { %1818 = vset.pattern.permute.xlu0 %v1864_v12 }
 0x11c   :  { %870 = vperm.xlu0 %1818, %v1999_v46  }
 0x11d   :  { %814 = vperm.xlu1 %1816, %v1999_v46  }
 0x120   :  { %866 = vperm.xlu0 %1818, %v2010_v48  }
 0x121   :  { %809 = vperm.xlu1 %1816, %v2010_v48  }
 0x124   :  { %1821 = vset.pattern.permute.xlu0 %v1865_v11 }
 0x125   :  { %1817 = vset.pattern.permute.xlu1 %v1865_v11  ;;  %838 = vperm.xlu0 %1821, %v1999_v46   ;;  %v2166_v46 = vpop.permute.xlu1 %954 }
 0x126   :  { %834 = vperm.xlu1 %1817, %v2010_v48   ;;  %v2169_v48 = vpop.permute.xlu0 %902 }
 0x129   :  { %826 = vperm.xlu0 %1821, %v2036_v51   ;;  %v2171_v20 = vpop.permute.xlu1 %1062 }
 0x12a   :  { %1819 = vset.pattern.permute.xlu1 %v1861_v55 }
 0x12b   :  { %804 = vperm.xlu1 %1819, %v2023_v49  }
 0x12d   :  { %1824 = vset.pattern.permute.xlu0 %v1856_v40 }
 0x12e   :  { %1182 = vperm.xlu0 %1824, %v1956_v23   ;;  %v2174_v23 = vpop.permute.xlu0 %898 }
 0x12f   :  { %1820 = vset.pattern.permute.xlu1 %v1865_v11 }
 0x130   :  { %830 = vperm.xlu1 %1820, %v2023_v49  }
 0x132   :  { %1178 = vperm.xlu0 %1824, %v1970_v29   ;;  %v2177_v29 = vpop.permute.xlu1 %1098 }
 0x134   :  { %1822 = vset.pattern.permute.xlu1 %v1861_v55  ;;  %v2179_v55 = vpop.permute.xlu0 %894 }
 0x135   :  { %799 = vperm.xlu1 %1822, %v2036_v51  }
 0x136   :  { %v915_v13 = vpop.permute.xlu1 %914 }
 0x137   :  { %v930_v34 = vmul.f32 %v915_v13, %v2099_v32 }
 0x138   :  { %v891_v19 = vpop.permute.xlu0 %890 }
 0x139   :  { %1823 = vset.pattern.permute.xlu1 %v1864_v12  ;;  %v2242_v12 = vrot.slane %v1780_v42, %v2209_v45 }
 0x13a   :  { %862 = vperm.xlu1 %1823, %v2023_v49   ;;  %v2181_v1 = vpop.permute.xlu1 %950 }
 0x13c   :  { %v2183_v3 = vpop.permute.xlu0 %1038 }
 0x13e   :  { %858 = vperm.xlu1 %1823, %v2036_v51   ;;  %v1059_v49 = vpop.permute.xlu1 %1058 }
 0x13f   :  { %v2268_v53 = vmul.f32 %v1059_v49, %v2103_v39 }
 0x140   :  { %v2185_v4 = vpop.permute.xlu0 %1034 }
 0x142   :  { %1825 = vset.pattern.permute.xlu1 %v1856_v40  ;;  %v2187_v26 = vpop.permute.xlu1 %1094 }
 0x144   :  { %v2189_v51 = vpop.permute.xlu0 %958 }
 0x146   :  { %v2191_v18 = vpop.permute.xlu1 %1030 }
 0x148   :  { %v2193_v40 = vpop.permute.xlu0 %946 }
 0x14a   :  { %v2195_v30 = vpop.permute.xlu1 %1054 }
 0x14b   :  { %2694 = vst [vmem:[#allocation9_spill] sm:$0xff] %v2195_v30  ;;  %v2246_v11 = vmul.f32 %v2195_v30, %v2096_v25 }
 0x169   :  { %v708_v31 = vpop.permute.xlu0 %707 }
 0x16b   :  { %v716_v24 = vpop.permute.xlu1 %715 }
 0x16c   :  { %v726_v54 = vsel %vm725_vm1, %v708_v31, %v716_v24  ;;  %v730_v58 = vsel %vm725_vm1, %v716_v24, %v708_v31  ;;  %v2250_v24 = vrot.slane %v1780_v42, %v2201_v27 }
 0x16d   :  { %v710_v28 = vpop.permute.xlu0 %709  ;;  %v2226_v59 = vmul.f32 %v2212_v52, %v726_v54  ;;  %v2233_v62 = vmul.f32 %v2217_v56, %v730_v58  ;;  %v929_v54 = vmul.f32 %v915_v13, %v2096_v25  ;;  %v1072_v25 = vmul.f32 %v1059_v49, %v2108_v44 }
 0x16f   :  { %v718_v21 = vpop.permute.xlu1 %717  ;;  %2697 = vst [vmem:[#allocation12_spill] sm:$0xff] %v2226_v59  ;;  %v906_v31 = vmul.f32 %v891_v19, %v2226_v59  ;;  %v905_v58 = vmul.f32 %v891_v19, %v2233_v62 }
 0x170   :  { %v727_v61 = vsel %vm725_vm1, %v710_v28, %v718_v21  ;;  %v731_v7 = vsel %vm725_vm1, %v718_v21, %v710_v28 }
 0x171   :  { %v756_v33 = vpop.permute.xlu0 %755  ;;  %v2255_v43 = vmul.f32 %v2217_v56, %v731_v7  ;;  %v2258_v28 = vmul.f32 %v2212_v52, %v727_v61  ;;  %v931_v7 = vmul.f32 %v2161_v16, %v2103_v39  ;;  %v938_v45 = vadd.f32 %v930_v34, %v906_v31 }
 0x172   :  { %v937_v31 = vadd.f32 %v929_v54, %v905_v58 }
 0x173   :  { %v764_v6 = vpop.permute.xlu1 %763  ;;  %v1048_v39 = vmul.f32 %v2185_v4, %v2258_v28 }
 0x174   :  { %v771_v36 = vsel %vm769_vm2, %v756_v33, %v764_v6  ;;  %v775_v42 = vsel %vm769_vm2, %v764_v6, %v756_v33 }
 0x175   :  { %v712_v41 = vpop.permute.xlu0 %711  ;;  %v2273_v61 = vmul.f32 %v2242_v12, %v771_v36  ;;  %v907_v36 = vmul.f32 %v2179_v55, %v2255_v43  ;;  %v2293_v30 = vmul.f32 %v2250_v24, %v775_v42  ;;  %v908_v42 = vmul.f32 %v2179_v55, %v2258_v28 }
 0x177   :  { %v720_v37 = vpop.permute.xlu1 %719  ;;  %v963_v32 = vmul.f32 %v2181_v1, %v2273_v61  ;;  %v939_v55 = vadd.f32 %v931_v7, %v907_v36 }
 0x178   :  { %v732_v27 = vsel %vm725_vm1, %v720_v37, %v712_v41 }
 0x179   :  { %v2206_v35 = vpop.permute.xlu0 %757  ;;  %v971_v36 = vadd.f32 %v963_v32, %v939_v55 }
 0x17b   :  { %v2199_v17 = vpop.permute.xlu1 %765 }
 0x17d   :  { %v2223_v9 = vpop.permute.xlu0 %713 }
 0x17f   :  { %v754_v50 = vpop.permute.xlu1 %753 }
 0x181   :  { %v2260_v21 = vpop.permute.xlu0 %759 }
 0x183   :  { %v2219_v57 = vpop.permute.xlu1 %721 }
 0x187   :  { %v2239_v10 = vpop.permute.xlu1 %767 }
 0x188   :  { %v777_v55 = vsel %vm769_vm2, %v2239_v10, %v2260_v21 }
 0x18b   :  { %v762_v5 = vpop.permute.xlu1 %761 }
 0x18c   :  { %v770_v13 = vsel %vm769_vm2, %v754_v50, %v762_v5  ;;  %v774_v19 = vsel %vm769_vm2, %v762_v5, %v754_v50  ;;  %v772_v5 = vsel %vm769_vm2, %v2206_v35, %v2199_v17 }
 0x18d   :  { %v2282_v33 = vmul.f32 %v2242_v12, %v770_v13  ;;  %v2285_v6 = vmul.f32 %v2250_v24, %v774_v19  ;;  %v2300_v13 = vmul.f32 %v2217_v56, %v732_v27  ;;  %v728_v19 = vsel %vm725_vm1, %v712_v41, %v720_v37 }
 0x18e   :  { %v1091_v50 = vpop.permute.xlu0 %1090  ;;  %v932_v27 = vmul.f32 %v2161_v16, %v2108_v44  ;;  %v2315_v22 = vmul.f32 %v2242_v12, %v772_v5  ;;  %v933_v37 = vmul.f32 %v2145_v63, %v2116_v38  ;;  %v964_v41 = vmul.f32 %v2181_v1, %v2293_v30 }
 0x18f   :  { %2698 = vst [vmem:[#allocation13_spill] sm:$0xff] %v2285_v6  ;;  %v962_v49 = vmul.f32 %v2193_v40, %v2285_v6  ;;  %v961_v34 = vmul.f32 %v2193_v40, %v2282_v33  ;;  %v1104_v54 = vmul.f32 %v1091_v50, %v2293_v30  ;;  %v1080_v40 = vadd.f32 %v1072_v25, %v1048_v39 }
 0x190   :  { %v909_v16 = vmul.f32 %v2174_v23, %v2300_v13  ;;  %v776_v5 = vsel %vm769_vm2, %v2199_v17, %v2206_v35  ;;  %v733_v25 = vsel %vm725_vm1, %v2219_v57, %v2223_v9  ;;  %v2337_v39 = vmul.f32 %v2212_v52, %v728_v19 }
 0x191   :  { %v970_v58 = vadd.f32 %v962_v49, %v938_v45  ;;  %v969_v6 = vadd.f32 %v961_v34, %v937_v31  ;;  %v940_v1 = vadd.f32 %v932_v27, %v908_v42  ;;  %v1073_v45 = vmul.f32 %v2171_v20, %v2116_v38 }
 0x192   :  { %v2318_v59 = vpop.permute.xlu0 %1086  ;;  %v934_v17 = vmul.f32 %v2145_v63, %v2119_v60  ;;  %v773_v35 = vsel %vm769_vm2, %v2260_v21, %v2239_v10  ;;  %v1112_v7 = vadd.f32 %v1104_v54, %v1080_v40  ;;  %v1047_v49 = vmul.f32 %v2185_v4, %v2255_v43 }
 0x193   :  { %985 = vrot.lane.b32.xlu0 %v970_v58, %s1866_s29  ;;  %977 = vrot.lane.b32.xlu1 %v969_v6, %s1866_s29  ;;  %v965_v6 = vmul.f32 %v2166_v46, %v2315_v22  ;;  %v1049_v31 = vmul.f32 %v2183_v3, %v2300_v13  ;;  %v2354_v34 = vmul.f32 %v2250_v24, %v776_v5 }
 0x194   :  { %v751_v63 = vmul.f32 %v2217_v56, %v733_v25  ;;  %v941_v32 = vadd.f32 %v933_v37, %v909_v16  ;;  %v972_v19 = vadd.f32 %v964_v41, %v940_v1  ;;  %v1074_v27 = vmul.f32 %v2171_v20, %v2119_v60 }
 0x195   :  { %v910_v4 = vmul.f32 %v2174_v23, %v2337_v39  ;;  %v1050_v54 = vmul.f32 %v2183_v3, %v2337_v39  ;;  %v729_v56 = vsel %vm725_vm1, %v2223_v9, %v2219_v57  ;;  %v795_v58 = vmul.f32 %v2242_v12, %v773_v35 }
 0x196   :  { %v1103_v20 = vmul.f32 %v1091_v50, %v2273_v61  ;;  %v973_v37 = vadd.f32 %v965_v6, %v941_v32  ;;  %v1105_v23 = vmul.f32 %v2187_v26, %v2315_v22  ;;  %v911_v3 = vmul.f32 %v2169_v48, %v751_v63 }
 0x197   :  { %1127 = vrot.lane.b32.xlu0 %v1112_v7, %s1867_s30  ;;  %v871_v42 = vpop.permute.xlu0 %870  ;;  %979 = vrot.lane.b32.xlu1 %v971_v36, %s1866_s29  ;;  %v1079_v41 = vadd.f32 %v2268_v53, %v1047_v49  ;;  %v1081_v16 = vadd.f32 %v1073_v45, %v1049_v31  ;;  %v966_v57 = vmul.f32 %v2166_v46, %v2354_v34 }
 0x198   :  { %v815_v40 = vpop.permute.xlu1 %814  ;;  %v752_v9 = vmul.f32 %v2212_v52, %v729_v56  ;;  %v1051_v12 = vmul.f32 %v2149_v14, %v751_v63  ;;  %v1106_v21 = vmul.f32 %v2187_v26, %v2354_v34  ;;  %v796_v50 = vmul.f32 %v2250_v24, %v777_v55 }
 0x199   :  { %v935_v53 = vmul.f32 %v2140_v2, %v2126_v47  ;;  %v967_v46 = vmul.f32 %v2189_v51, %v795_v58  ;;  %v942_v25 = vadd.f32 %v934_v17, %v910_v4  ;;  %v1111_v52 = vadd.f32 %v1103_v20, %v1079_v41 }
 0x19a   :  { %v1113_v1 = vadd.f32 %v1105_v23, %v1081_v16  ;;  %v1075_v45 = vmul.f32 %v2155_v15, %v2126_v47  ;;  %v1082_v35 = vadd.f32 %v1074_v27, %v1050_v54  ;;  %v1045_v7 = vmul.f32 %v2191_v18, %v2233_v62 }
 0x19b   :  { %981 = vrot.lane.b32.xlu0 %v973_v37, %s1866_s29  ;;  %v867_v10 = vpop.permute.xlu0 %866  ;;  %987 = vrot.lane.b32.xlu1 %v972_v19, %s1866_s29  ;;  %v943_v36 = vadd.f32 %v935_v53, %v911_v3  ;;  %v974_v26 = vadd.f32 %v966_v57, %v942_v25  ;;  %v936_v24 = vmul.f32 %v2140_v2, %v2132_v0 }
 0x19c   :  { %v810_v5 = vpop.permute.xlu1 %809  ;;  %v912_v6 = vmul.f32 %v2169_v48, %v752_v9  ;;  %v1083_v17 = vadd.f32 %v1075_v45, %v1051_v12  ;;  %v1114_v49 = vadd.f32 %v1106_v21, %v1082_v35  ;;  %v879_v31 = vmul.f32 %v871_v42, %v795_v58  ;;  %v2701_v35 = vld [vmem:[#allocation7_spill] sm:$0xff] }
 0x19d   :  { %v975_v19 = vadd.f32 %v967_v46, %v943_v36  ;;  %v1107_v27 = vmul.f32 %v2177_v29, %v795_v58  ;;  %v968_v4 = vmul.f32 %v2189_v51, %v796_v50  ;;  %v823_v54 = vmul.f32 %v815_v40, %v751_v63 }
 0x19e   :  { %v824_v56 = vmul.f32 %v815_v40, %v752_v9  ;;  %v821_v20 = vmul.f32 %v810_v5, %v2300_v13  ;;  %v822_v37 = vmul.f32 %v810_v5, %v2337_v39  ;;  %v880_v41 = vmul.f32 %v871_v42, %v796_v50 }
 0x19f   :  { %1121 = vrot.lane.b32.xlu0 %v1113_v1, %s1867_s30  ;;  %1119 = vrot.lane.b32.xlu1 %v1111_v52, %s1867_s30  ;;  %v878_v51 = vmul.f32 %v867_v10, %v2354_v34  ;;  %v1101_v13 = vmul.f32 %v2318_v59, %v2282_v33  ;;  %v1052_v21 = vmul.f32 %v2149_v14, %v752_v9  ;;  %v2700_v1 = vld [vmem:[#allocation5_spill] sm:$0xff] }
 0x1a0   :  { %v839_v32 = vpop.permute.xlu0 %838  ;;  %v944_v34 = vadd.f32 %v936_v24, %v912_v6  ;;  %v1076_v53 = vmul.f32 %v2155_v15, %v2132_v0  ;;  %v1108_v46 = vmul.f32 %v2177_v29, %v796_v50  ;;  %v2703_v29 = vld [vmem:[#allocation13_spill] sm:$0xff]  ;;  %v2705_v6 = vmov 2  }
 0x1a1   :  { %v847_v55 = vmul.f32 %v839_v32, %v2126_v47  ;;  %v848_v2 = vmul.f32 %v839_v32, %v2132_v0  ;;  %v835_v48 = vpop.permute.xlu1 %834  ;;  %v877_v47 = vmul.f32 %v867_v10, %v2315_v22  ;;  %v1077_v22 = vadd.f32 %v2246_v11, %v1045_v7  ;;  %v2699_v11 = vld [vmem:[#allocation12_spill] sm:$0xff]  ;;  %v2702_v0 = vld [vmem:[#allocation9_spill] sm:$0xff] }
 0x1a2   :  { %v845_v23 = vmul.f32 %v835_v48, %v2116_v38  ;;  %v846_v3 = vmul.f32 %v835_v48, %v2119_v60  ;;  %v1115_v60 = vadd.f32 %v1107_v27, %v1083_v17  ;;  %v976_v5 = vadd.f32 %v968_v4, %v944_v34  ;;  %v2704_v7 = vld [vmem:[#allocation8_spill] sm:$0xff] }
 0x1a3   :  { %v855_v16 = vadd.f32 %v847_v55, %v823_v54  ;;  %v856_v58 = vadd.f32 %v848_v2, %v824_v56  ;;  %983 = vrot.lane.b32.xlu0 %v975_v19, %s1866_s29  ;;  %989 = vrot.lane.b32.xlu1 %v974_v26, %s1866_s29  ;;  %v1109_v10 = vadd.f32 %v1101_v13, %v1077_v22  ;;  %v1782_v13 = vld [vmem:[%s2670_s5 + $0x3] ss:$4 sm:$0x3] }
 0x1a4   :  { %v853_v63 = vadd.f32 %v845_v23, %v821_v20  ;;  %v854_v40 = vadd.f32 %v846_v3, %v822_v37  ;;  %v1084_v14 = vadd.f32 %v1076_v53, %v1052_v21  ;;  %v1046_v52 = vmul.f32 %v2191_v18, %v2699_v11  ;;  %v1828_v18 = vld [vmem:[%s2669_s4 + $0x8] sm:$0xff] }
 0x1a5   :  { %v2414_v39 = vadd.f32 %v879_v31, %v855_v16  ;;  %v2416_v38 = vadd.f32 %v880_v41, %v856_v58  ;;  %v1070_v15 = vmul.f32 %v2702_v0, %v2701_v35  ;;  %v1102_v50 = vmul.f32 %v2318_v59, %v2703_v29  ;;  %v1781_v41 = vld [vmem:[%s2670_s5 + $0x2] ss:$4 sm:$0x3] }
 0x1a6   :  { %v2418_v42 = vadd.f32 %v877_v47, %v853_v63  ;;  %v2420_v57 = vadd.f32 %v878_v51, %v854_v40  ;;  %v805_v12 = vpop.permute.xlu1 %804  ;;  %v1116_v9 = vadd.f32 %v1108_v46, %v1084_v14  ;;  %v2706_v16 = vld [vmem:[#allocation11_spill] sm:$0xff]  ;;  %v2707_v47 = vld [vmem:[#allocation10_spill] sm:$0xff] }
 0x1a7   :  { %1123 = vrot.lane.b32.xlu0 %v1115_v60, %s1867_s30  ;;  %1129 = vrot.lane.b32.xlu1 %v1114_v49, %s1867_s30  ;;  %v1078_v24 = vadd.f32 %v1070_v15, %v1046_v52  ;;  %v819_v17 = vmul.f32 %v805_v12, %v2255_v43  ;;  %v820_v49 = vmul.f32 %v805_v12, %v2258_v28  ;;  %v1829_v43 = vld [vmem:[%s2669_s4] sm:$0xff]  ;;  %v2460_v28 = vpop.permute.xlu0 %826 }
 0x1a8   :  { %v2475_v58 = vrot.slane %v1781_v41, %v2706_v16  ;;  %v2478_v51 = vrot.slane %v1781_v41, %v2707_v47  ;;  %v2491_v34 = vrot.slane %v1782_v13, %v2706_v16  ;;  %v2708_v41 = vld [vmem:[#allocation6_spill] sm:$0xff] }
 0x1a9   :  { %v1110_v31 = vadd.f32 %v1102_v50, %v1078_v24  ;;  %v841_v16 = vmul.f32 %v2460_v28, %v2708_v41 }
 0x1ab   :  { %v831_v25 = vpop.permute.xlu1 %830  ;;  %1117 = vrot.lane.b32.xlu0 %v1109_v10, %s1867_s30  ;;  %991 = vrot.lane.b32.xlu1 %v976_v5, %s1866_s29  ;;  %v2462_v56 = vpop.permute.xlu0 %1182  ;;  %v2494_v10 = vrot.slane %v1782_v13, %v2707_v47 }
 0x1ac   :  { %v843_v36 = vmul.f32 %v831_v25, %v2704_v7  ;;  %v844_v26 = vmul.f32 %v831_v25, %v2108_v44 }
 0x1ae   :  { %v851_v19 = vadd.f32 %v843_v36, %v819_v17  ;;  %v852_v59 = vadd.f32 %v844_v26, %v820_v49 }
 0x1af   :  { %1170 = vperm.xlu0 %1824, %v2700_v1   ;;  %1131 = vrot.lane.b32.xlu1 %v1116_v9, %s1867_s30 }
 0x1b0   :  { %v2435_v45 = vpop.permute.xlu1 %799 }
 0x1b3   :  { %1174 = vperm.xlu1 %1825, %v1828_v18   ;;  %1827 = vset.pattern.permute.xlu0 %v2705_v6 }
 0x1b5   :  { %v863_v32 = vpop.permute.xlu1 %862 }
 0x1b6   :  { %v875_v27 = vmul.f32 %v863_v32, %v2273_v61  ;;  %v876_v44 = vmul.f32 %v863_v32, %v2293_v30  ;;  %v1179_v61 = vpop.permute.xlu0 %1178 }
 0x1b7   :  { %1125 = vrot.lane.b32.xlu1 %v1110_v31, %s1867_s30 }
 0x1b8   :  { %v2452_v4 = vadd.f32 %v875_v27, %v851_v19  ;;  %v2454_v54 = vadd.f32 %v876_v44, %v852_v59  ;;  %1826 = vset.pattern.permute.xlu1 %v2705_v6 }
 0x1b9   :  { %v2464_v55 = vpop.permute.xlu1 %858 }
 0x1bb   :  { %1759 = vperm.xlu1 %1826, %v1829_v43  }
 0x205   :  { %v2466_v30 = vpop.permute.xlu0 %985  ;;  %v2468_v2 = vpop.permute.xlu1 %977 }
 0x209   :  { %v1128_v48 = vpop.permute.xlu0 %1127  ;;  %v980_v20 = vpop.permute.xlu1 %979 }
 0x20d   :  { %v988_v37 = vpop.permute.xlu1 %987  ;;  %v982_v23 = vpop.permute.xlu0 %981 }
 0x211   :  { %v1120_v3 = vpop.permute.xlu1 %1119  ;;  %v1122_v63 = vpop.permute.xlu0 %1121 }
 0x212   :  { %v1135_v13 = vsel %vm1133_vm4, %v1120_v3, %v1128_v48 }
 0x215   :  { %v990_v40 = vpop.permute.xlu1 %989  ;;  %v984_v25 = vpop.permute.xlu0 %983 }
 0x216   :  { %v996_v60 = vsel %vm993_vm3, %v982_v23, %v990_v40  ;;  %v1000_v12 = vsel %vm993_vm3, %v990_v40, %v982_v23  ;;  %v999_v23 = vsel %vm993_vm3, %v988_v37, %v980_v20  ;;  %v817_v40 = vmul.f32 %v2435_v45, %v2233_v62 }
 0x217   :  { %v1017_v21 = vmul.f32 %v2475_v58, %v1000_v12  ;;  %v1018_v22 = vmul.f32 %v2478_v51, %v996_v60  ;;  %v1015_v60 = vmul.f32 %v2475_v58, %v999_v23  ;;  %v818_v62 = vmul.f32 %v2435_v45, %v2699_v11 }
 0x218   :  { %v998_v11 = vsel %vm993_vm3, %v2466_v30, %v2468_v2 }
 0x219   :  { %v1130_v5 = vpop.permute.xlu1 %1129  ;;  %v1025_v14 = vadd.f32 %v1017_v21, %v2418_v42  ;;  %v1026_v9 = vadd.f32 %v1018_v22, %v2420_v57  ;;  %v1124_v57 = vpop.permute.xlu0 %1123 }
 0x21a   :  { %v1136_v53 = vsel %vm1133_vm4, %v1122_v63, %v1130_v5  ;;  %v1140_v46 = vsel %vm1133_vm4, %v1130_v5, %v1122_v63  ;;  %v842_v5 = vmul.f32 %v2460_v28, %v2701_v35  ;;  %v1023_v35 = vadd.f32 %v1015_v60, %v2452_v4 }
 0x21b   :  { %v1157_v52 = vmul.f32 %v2491_v34, %v1136_v53  ;;  %v1158_v1 = vmul.f32 %v2494_v10, %v1140_v46 }
 0x21d   :  { %v1165_v0 = vadd.f32 %v1157_v52, %v1025_v14  ;;  %v1166_v15 = vadd.f32 %v1158_v1, %v1026_v9  ;;  %v992_v50 = vpop.permute.xlu1 %991  ;;  %v849_v9 = vadd.f32 %v841_v16, %v817_v40 }
 0x21e   :  { %v997_v7 = vsel %vm993_vm3, %v984_v25, %v992_v50  ;;  %v1001_v36 = vsel %vm993_vm3, %v992_v50, %v984_v25 }
 0x21f   :  { %v1189_v26 = vadd.f32 %v1179_v61, %v1165_v0  ;;  %v1190_v24 = vadd.f32 %v1179_v61, %v1166_v15  ;;  %v1019_v18 = vmul.f32 %v2475_v58, %v1001_v36  ;;  %v1020_v42 = vmul.f32 %v2478_v51, %v997_v7 }
 0x220   :  { %v995_v61 = vsel %vm993_vm3, %v980_v20, %v988_v37  ;;  %v1139_v20 = vsel %vm1133_vm4, %v1128_v48, %v1120_v3  ;;  %v1155_v48 = vmul.f32 %v2491_v34, %v1135_v13  ;;  %v873_v0 = vmul.f32 %v2464_v55, %v2282_v33 }
 0x221   :  { %v1197_v6 = vmax.f32 %v1189_v26, 0.0  ;;  %v1198_v17 = vmax.f32 %v1190_v24, 0.0  ;;  %v1132_v49 = vpop.permute.xlu1 %1131  ;;  %v1027_v31 = vadd.f32 %v1019_v18, %v2414_v39  ;;  %v1028_v27 = vadd.f32 %v1020_v42, %v2416_v38  ;;  %v34_v38 = vld [vmem:[%s2668_s3] sm:$0xff] }
 0x222   :  { %v1137_v32 = vsel %vm1133_vm4, %v1124_v57, %v1132_v49  ;;  %v1141_v19 = vsel %vm1133_vm4, %v1132_v49, %v1124_v57  ;;  %v1016_v12 = vmul.f32 %v2478_v51, %v995_v61  ;;  %v1211_v46 = vsel %vm1209_vm5, %v34_v38, 0 }
 0x223   :  { %v1206_v59 = vmin.f32 %v1198_v17, 6.0  ;;  %v1159_v44 = vmul.f32 %v2491_v34, %v1137_v32  ;;  %v1160_v43 = vmul.f32 %v2494_v10, %v1141_v19  ;;  %v1205_v39 = vmin.f32 %v1197_v6, 6.0 }
 0x224   :  { %v1156_v3 = vmul.f32 %v2494_v10, %v1139_v20  ;;  %v1024_v28 = vadd.f32 %v1016_v12, %v2454_v54  ;;  %v874_v15 = vmul.f32 %v2464_v55, %v2703_v29  ;;  %v2567_v7 = vand.u32 4294901760, %v1211_v46 }
 0x225   :  { %v1167_v47 = vadd.f32 %v1159_v44, %v1027_v31  ;;  %v1168_v63 = vadd.f32 %v1160_v43, %v1028_v27  ;;  %v2533_v37 = vand.u32 4294901760, %v1206_v59  ;;  %v2543_v53 = vand.u32 4294901760, %v1205_v39  ;;  %v1118_v44 = vpop.permute.xlu0 %1117 }
 0x226   :  { %v850_v54 = vadd.f32 %v842_v5, %v818_v62  ;;  %v1013_v26 = vmul.f32 %v2475_v58, %v998_v11  ;;  %v881_v6 = vadd.f32 %v873_v0, %v849_v9 }
 0x227   :  { %v1191_v21 = vadd.f32 %v2462_v56, %v1167_v47  ;;  %v1192_v22 = vadd.f32 %v2462_v56, %v1168_v63  ;;  %v994_v56 = vsel %vm993_vm3, %v2468_v2, %v2466_v30  ;;  %v2556_v45 = vsub.f32 %v1206_v59, %v2533_v37 }
 0x228   :  { %v2565_v50 = vsub.f32 %v1205_v39, %v2543_v53  ;;  %v1163_v30 = vadd.f32 %v1155_v48, %v1023_v35  ;;  %v1164_v2 = vadd.f32 %v1156_v3, %v1024_v28  ;;  %v1014_v24 = vmul.f32 %v2478_v51, %v994_v56 }
 0x229   :  { %v1199_v25 = vmax.f32 %v1191_v21, 0.0  ;;  %v1200_v14 = vmax.f32 %v1192_v22, 0.0  ;;  %v1335_v18 = vand.u32 4294901760, %v2556_v45  ;;  %v882_v17 = vadd.f32 %v874_v15, %v850_v54 }
 0x22a   :  { %v1341_v58 = vand.u32 4294901760, %v2565_v50  ;;  %v2586_v51 = vsub.f32 %v1211_v46, %v2567_v7  ;;  %v1021_v59 = vadd.f32 %v1013_v26, %v881_v6  ;;  %v1171_v22 = vpop.permute.xlu0 %1170  ;;  %v2709_v6 = vmov 0.0  }
 0x22b   :  { %v1207_v52 = vmin.f32 %v1199_v25, 6.0  ;;  %v1208_v1 = vmin.f32 %v1200_v14, 6.0  ;;  %v1022_v27 = vadd.f32 %v1014_v24, %v882_v17  ;;  %v1336_v61 = vsub.f32 %v2556_v45, %v1335_v18 }
 0x22c   :  { %v1342_v8 = vsub.f32 %v2565_v50, %v1341_v58 }
 0x22d   :  { %v2569_v36 = vand.u32 4294901760, %v1208_v1  ;;  %v2571_v4 = vand.u32 4294901760, %v1207_v52  ;;  %v1337_v3 = vand.u32 4294901760, %v1336_v61 }
 0x22e   :  { %v1175_v33 = vpop.permute.xlu1 %1174  ;;  %v1343_v14 = vand.u32 4294901760, %v1342_v8 }
 0x22f   :  { %v1187_v29 = vadd.f32 %v1175_v33, %v1163_v30  ;;  %v1188_v55 = vadd.f32 %v1175_v33, %v1164_v2  ;;  %1238 = vmatprep.subr.mxu0 %v2569_v36  ;;  %v2578_v42 = vsub.f32 %v1208_v1, %v2569_v36  ;;  %v2581_v57 = vsub.f32 %v1207_v52, %v2571_v4 }
 0x230   :  { %1240 = vmatpush1.msra.mxu0 %v2571_v4 }
 0x231   :  { %v1195_v49 = vmax.f32 %v1187_v29, 0.0  ;;  %v1196_v31 = vmax.f32 %v1188_v55, 0.0  ;;  %1242 = vmatprep.subr.mxu0 %v2533_v37  ;;  %v1323_v32 = vand.u32 4294901760, %v2578_v42  ;;  %v1329_v19 = vand.u32 4294901760, %v2581_v57 }
 0x232   :  { %1244 = vmatpush1.msra.mxu0 %v2543_v53  ;;  %v1126_v43 = vpop.permute.xlu1 %1125 }
 0x233   :  { %v1203_v23 = vmin.f32 %v1195_v49, 6.0  ;;  %v1204_v39 = vmin.f32 %v1196_v31, 6.0  ;;  %v1134_v41 = vsel %vm1133_vm4, %v1118_v44, %v1126_v43  ;;  %v1138_v16 = vsel %vm1133_vm4, %v1126_v43, %v1118_v44 }
 0x234   :  { %v1153_v47 = vmul.f32 %v2491_v34, %v1134_v41  ;;  %v1154_v63 = vmul.f32 %v2494_v10, %v1138_v16  ;;  %v1324_v38 = vsub.f32 %v2578_v42, %v1323_v32  ;;  %v1330_v40 = vsub.f32 %v2581_v57, %v1329_v19 }
 0x235   :  { %v2607_v13 = vand.u32 4294901760, %v1204_v39  ;;  %v2609_v20 = vand.u32 4294901760, %v1203_v23  ;;  %v1288_v34 = vand.u32 4294901760, %v2586_v51 }
 0x236   :  { %v1161_v60 = vadd.f32 %v1153_v47, %v1021_v59  ;;  %v1162_v10 = vadd.f32 %v1154_v63, %v1022_v27  ;;  %v1325_v12 = vand.u32 4294901760, %v1324_v38  ;;  %v1331_v21 = vand.u32 4294901760, %v1330_v40  ;;  %v1760_v16 = vpop.permute.xlu1 %1759  ;;  %v1830_v63 = vld [vmem:[%s2665_s0] sm:$0xff]  ;;  %v1831_v40 = vld [vmem:[%s2665_s0 + $0x8] sm:$0xff] }
 0x237   :  { %v1346_v5 = vsub.f32 %v1204_v39, %v2607_v13  ;;  %v1352_v62 = vsub.f32 %v1203_v23, %v2609_v20  ;;  %1246 = vmatprep.subr.mxu0 %v2607_v13  ;;  %v1289_v35 = vsub.f32 %v2586_v51, %v1288_v34 }
 0x238   :  { %v1185_v46 = vadd.f32 %v1171_v22, %v1161_v60  ;;  %v1186_v48 = vadd.f32 %v1171_v22, %v1162_v10  ;;  %1326 = vmatprep.subr.mxu1 %v1325_v12  ;;  %1248 = vmatpush1.msra.mxu0 %v2609_v20 }
 0x239   :  { %v1353_v25 = vand.u32 4294901760, %v1352_v62  ;;  %1332 = vmatpush1.msra.mxu1 %v1331_v21  ;;  %v1347_v9 = vand.u32 4294901760, %v1346_v5  ;;  %v1290_v26 = vand.u32 4294901760, %v1289_v35 }
 0x23a   :  { %v1193_v56 = vmax.f32 %v1185_v46, 0.0  ;;  %v1194_v11 = vmax.f32 %v1186_v48, 0.0  ;;  %1338 = vmatprep.subr.mxu1 %v1337_v3 }
 0x23b   :  { %1344 = vmatpush1.msra.mxu1 %v1343_v14  ;;  %v1348_v28 = vsub.f32 %v1346_v5, %v1347_v9  ;;  %v1354_v52 = vsub.f32 %v1352_v62, %v1353_v25 }
 0x23c   :  { %v1201_v1 = vmin.f32 %v1193_v56, 6.0  ;;  %v1202_v0 = vmin.f32 %v1194_v11, 6.0 }
 0x23d   :  { %v1349_v15 = vand.u32 4294901760, %v1348_v28  ;;  %v1355_v30 = vand.u32 4294901760, %v1354_v52 }
 0x23e   :  { %v1249_v2 = vand.u32 4294901760, %v1202_v0  ;;  %v1251_v54 = vand.u32 4294901760, %v1201_v1 }
 0x23f   :  { %1350 = vmatprep.subr.mxu1 %v1349_v15 }
 0x240   :  { %1250 = vmatprep.subr.mxu0 %v1249_v2  ;;  %1356 = vmatpush1.msra.mxu1 %v1355_v30  ;;  %v1358_v24 = vsub.f32 %v1202_v0, %v1249_v2  ;;  %v1364_v33 = vsub.f32 %v1201_v1, %v1251_v54 }
 0x241   :  { %1252 = vmatpush1.msra.mxu0 %v1251_v54 }
 0x242   :  { %1435 = vmatprep.subr.mxu0 %v2578_v42  ;;  %1291 = vmatmul.mubr.f32.vlgmr.msra.gmra.mxu0 %v1290_v26  ;;  %v1359_v29 = vand.u32 4294901760, %v1358_v24  ;;  %v1365_v55 = vand.u32 4294901760, %v1364_v33 }
 0x243   :  { %1438 = vmatpush1.msra.mxu0 %v2581_v57  ;;  %1489 = vmatprep.mubr.f32.mxu0 %v2709_v6 }
 0x244   :  { %1441 = vmatprep.subr.mxu0 %v2556_v45  ;;  %v1360_v17 = vsub.f32 %v1358_v24, %v1359_v29  ;;  %v1366_v49 = vsub.f32 %v1364_v33, %v1365_v55 }
 0x245   :  { %1444 = vmatpush1.msra.mxu0 %v2565_v50 }
 0x246   :  { %1447 = vmatprep.subr.mxu0 %v1346_v5  ;;  %v1361_v31 = vand.u32 4294901760, %v1360_v17  ;;  %v1367_v59 = vand.u32 4294901760, %v1366_v49 }
 0x247   :  { %1450 = vmatpush1.msra.mxu0 %v1352_v62 }
 0x248   :  { %1362 = vmatprep.subr.mxu1 %v1361_v31  ;;  %1453 = vmatprep.subr.mxu0 %v1358_v24 }
 0x249   :  { %1368 = vmatpush1.msra.mxu1 %v1367_v59  ;;  %1456 = vmatpush1.msra.mxu0 %v1364_v33 }
 0x24a   :  { %1403 = vmatmul.mubr.f32.vlgmr.msra.gmra.mxu1 %v2567_v7  ;;  %1523 = vmatprep.subr.mxu1 %v2569_v36 }
 0x24b   :  { %1607 = vmatprep.subr.mxu0 %v1323_v32  ;;  %1492 = vmatmul.mubr.f32.vlgmr.msra.gmra.mxu0 %v2586_v51 }
 0x24c   :  { %1525 = vmatpush1.msra.mxu1 %v2571_v4  ;;  %1611 = vmatpush1.msra.mxu0 %v1329_v19 }
 0x24d   :  { %1527 = vmatprep.subr.mxu1 %v2533_v37  ;;  %1615 = vmatprep.subr.mxu0 %v1335_v18 }
 0x24e   :  { %1529 = vmatpush1.msra.mxu1 %v2543_v53  ;;  %1619 = vmatpush1.msra.mxu0 %v1341_v58 }
 0x24f   :  { %1531 = vmatprep.subr.mxu1 %v2607_v13  ;;  %1623 = vmatprep.subr.mxu0 %v1347_v9 }
 0x250   :  { %1533 = vmatpush1.msra.mxu1 %v2609_v20  ;;  %1627 = vmatpush1.msra.mxu0 %v1353_v25 }
 0x251   :  { %1535 = vmatprep.subr.mxu1 %v1249_v2  ;;  %1631 = vmatprep.subr.mxu0 %v1359_v29 }
 0x252   :  { %1537 = vmatpush1.msra.mxu1 %v1251_v54  ;;  %1570 = vmatprep.mubr.f32.mxu1 %v2709_v6 }
 0x253   :  { %1635 = vmatpush1.msra.mxu0 %v1365_v55  ;;  %1574 = vmatmul.mubr.f32.vlgmr.msra.gmra.mxu1 %v1288_v34 }
 0x254   :  { %1701 = vmatprep.subr.mxu1 %v2569_v36  ;;  %1668 = vmatprep.mubr.f32.mxu0 %v2709_v6 }
 0x255   :  { %1703 = vmatpush1.msra.mxu1 %v2571_v4  ;;  %1670 = vmatmul.mubr.f32.vlgmr.msra.gmra.mxu0 %v2567_v7 }
 0x256   :  { %1705 = vmatprep.subr.mxu1 %v2533_v37  ;;  %1748 = vmatprep.mubr.f32.mxu1 %v2709_v6 }
 0x257   :  { %1707 = vmatpush1.msra.mxu1 %v2543_v53 }
 0x258   :  { %1709 = vmatprep.subr.mxu1 %v2607_v13 }
 0x259   :  { %1711 = vmatpush1.msra.mxu1 %v2609_v20 }
 0x25a   :  { %1713 = vmatprep.subr.mxu1 %v1249_v2 }
 0x25b   :  { %1715 = vmatpush1.msra.mxu1 %v1251_v54 }
 0x25c   :  { %1750 = vmatmul.mubr.f32.vlgmr.msra.gmra.mxu1 %v2567_v7 }
 0x302   :  { %v1292_v45 = vpop.f32.mrf.mxu0 }
 0x304   :  { %v1294_v50 = vpop.f32.mrf.mxu0 }
 0x30a   :  { %v1404_v36 = vpop.f32.mrf.mxu1 }
 0x30b   :  { %v1493_v18 = vpop.f32.mrf.mxu0  ;;  %v1405_v42 = vadd.f32 %v1404_v36, %v1292_v45 }
 0x30c   :  { %v1406_v4 = vpop.f32.mrf.mxu1 }
 0x30d   :  { %v1407_v57 = vadd.f32 %v1406_v4, %v1294_v50  ;;  %v1495_v58 = vpop.f32.mrf.mxu0  ;;  %v1494_v51 = vadd.f32 %v1493_v18, %v1405_v42 }
 0x30f   :  { %v1496_v19 = vadd.f32 %v1495_v58, %v1407_v57 }
 0x313   :  { %v1575_v37 = vpop.f32.mrf.mxu1 }
 0x314   :  { %v1576_v27 = vadd.f32 %v1575_v37, %v1494_v51 }
 0x315   :  { %v1577_v32 = vpop.f32.mrf.mxu1  ;;  %v1671_v53 = vpop.f32.mrf.mxu0 }
 0x316   :  { %v1578_v44 = vadd.f32 %v1577_v32, %v1496_v19  ;;  %v1672_v61 = vadd.f32 %v1671_v53, %v1576_v27 }
 0x317   :  { %v1673_v43 = vpop.f32.mrf.mxu0 }
 0x318   :  { %v1674_v39 = vadd.f32 %v1673_v43, %v1578_v44 }
 0x31c   :  { %v1751_v23 = vpop.f32.mrf.mxu1 }
 0x31d   :  { %v1752_v7 = vadd.f32 %v1751_v23, %v1672_v61 }
 0x31e   :  { %v1753_v41 = vpop.f32.mrf.mxu1 }
 0x31f   :  { %v1754_v47 = vadd.f32 %v1753_v41, %v1674_v39  ;;  %v1756_v38 = vadd.f32 %v1830_v63, %v1752_v7 }
 0x321   :  { %v1757_v13 = vadd.f32 %v1831_v40, %v1754_v47  ;;  %v1762_v20 = vadd.f32 %v1760_v16, %v1756_v38 }
 0x323   :  { %v1763_v8 = vadd.f32 %v1760_v16, %v1757_v13  ;;  %1764 = vst [vmem:[#allocation2] sm:$0xff] %v1762_v20 }
 0x325   :  { %1765 = vst [vmem:[#allocation2 + $0x8] sm:$0xff] %v1763_v8 }
 0x326   :  { %1843 = shalt.err (!%p1840_p4)
}
 0x327   :  { %1775 = dma.vmem_to_hbm [thread:$0]  %s1773_s16, 256, %s2671_s6, [#allocation3]  }
 0x328   :  { %1852 = dma.done.wait [#allocation3], 256  }
 0x329   :  { %1853 = vsyncadd [#allocation3], 4294967040 }
 0x32a   :  { %1779 = vsyncpa [#allocation3], 1 }

</bundles_post_ra>
